<compile_context>
chip_gen: v7x
topology: tpu7x:2x2x1
jax: 0.10.0
libtpu: 0.0.40
codegen_flags: <defaults>
</compile_context>

<pallas_src>
import jax
import jax.numpy as jnp
import numpy as np
from jax.experimental import pallas as pl
from jax.experimental.pallas import tpu as pltpu


# ---------------------------------------------------------------------------
# build_grid (same as the PyTorch helper, returns (1, H, W, 4) float32)
# ---------------------------------------------------------------------------
def build_grid(resolution):
    ranges = [np.linspace(0.0, 1.0, num=res) for res in resolution]
    grid = np.meshgrid(*ranges, sparse=False, indexing='ij')
    grid = np.stack(grid, axis=-1)
    grid = np.reshape(grid, [resolution[0], resolution[1], -1])
    grid = np.expand_dims(grid, axis=0).astype(np.float32)
    return jnp.asarray(np.concatenate([grid, 1.0 - grid], axis=-1))


# ---------------------------------------------------------------------------
# Kernel: one batch element per grid step, fully lane-dense
# ---------------------------------------------------------------------------
def soft_pos_embed_kernel(x_ref, g_ref, w_ref, b_ref, o_ref):
    # x_ref: (1, H, W*C)  activation slab for one batch element (lane-dense)
    # g_ref: (H, W*4)     positional grid, rows flattened (batch-invariant)
    # w_ref: (W*4, W*C)   block-diagonal expansion of the Linear(4, C) weight
    # b_ref: (1, W*C)     bias tiled per spatial column
    # o_ref: (1, H, W*C)
    pos = jnp.dot(g_ref[...], w_ref[...],
                  preferred_element_type=jnp.float32) + b_ref[0]
    o_ref[0] = x_ref[0] + pos


# ---------------------------------------------------------------------------
# Wrapper
# ---------------------------------------------------------------------------
def soft_position_embed(inputs_nhwc, grid4, weight, bias):
    """SoftPositionEmbed.forward.

    inputs_nhwc: (B, H, W, C) float32
    grid4:       (1, H, W, 4) float32 (from build_grid)
    weight:      (C, 4) float32  -- PyTorch nn.Linear(4, C).weight layout
    bias:        (C,)  float32   -- PyTorch nn.Linear(4, C).bias
    returns:     (B, H, W, C) float32 == inputs + Linear(grid)
    """
    B, H, W, C = inputs_nhwc.shape

    # Free contiguous reshapes: present lane-dense (last dim W*C, multiple of 128).
    x_dense = inputs_nhwc.reshape(B, H, W * C)
    g_dense = grid4.reshape(H, W * 4)

    # Layout plumbing (batch-invariant, tiny): block-diagonal weight so the
    # in-kernel matmul produces the lane-dense (H, W*C) positional slab directly.
    #   w_bd[w*4 + k, v*C + c] = (w == v) * weight.T[k, c]
    w_t = weight.T.astype(jnp.float32)                                   # (4, C)
    w_bd = jnp.einsum('wv,kc->wkvc', jnp.eye(W, dtype=jnp.float32),
                      w_t).reshape(W * 4, W * C)
    b_dense = jnp.tile(bias.astype(jnp.float32), W).reshape(1, W * C)

    out = pl.pallas_call(
        soft_pos_embed_kernel,
        out_shape=jax.ShapeDtypeStruct((B, H, W * C), jnp.float32),
        grid=(B,),
        in_specs=[
            pl.BlockSpec((1, H, W * C), lambda i: (i, 0, 0)),
            pl.BlockSpec((H, W * 4), lambda i: (0, 0)),
            pl.BlockSpec((W * 4, W * C), lambda i: (0, 0)),
            pl.BlockSpec((1, W * C), lambda i: (0, 0)),
        ],
        out_specs=pl.BlockSpec((1, H, W * C), lambda i: (i, 0, 0)),
        compiler_params=pltpu.CompilerParams(
            dimension_semantics=("parallel",)),
    )(x_dense, g_dense, w_bd, b_dense)

    return out.reshape(B, H, W, C)


# ---------------------------------------------------------------------------
# Pure-JAX reference (PyTorch semantics: grid @ weight.T + bias, then add)
# ---------------------------------------------------------------------------
def soft_position_embed_reference(inputs_nhwc, grid4, weight, bias):
    pos = jnp.einsum('bhwk,ck->bhwc', grid4, weight) + bias
    return inputs_nhwc + pos


# ---------------------------------------------------------------------------
# Main
# ---------------------------------------------------------------------------
if __name__ == "__main__":
    B, H, W, hidden = 2, 16, 16, 32
    resolution = (H, W)

    key = jax.random.PRNGKey(0)
    k_in, k_w, k_b = jax.random.split(key, 3)

    inputs = jax.random.normal(k_in, (B, H, W, hidden), jnp.float32)
    weight = 0.1 * jax.random.normal(k_w, (hidden, 4), jnp.float32)  # nn.Linear(4, hidden).weight
    bias = 0.1 * jax.random.normal(k_b, (hidden,), jnp.float32)      # nn.Linear(4, hidden).bias
    grid4 = build_grid(resolution)                                   # (1, H, W, 4)

    fwd = jax.jit(soft_position_embed)
    out = fwd(inputs, grid4, weight, bias)
    out = jax.block_until_ready(out)

    ref = soft_position_embed_reference(inputs, grid4, weight, bias)
    assert out.shape == (B, H, W, hidden), out.shape
    np.testing.assert_allclose(np.asarray(out), np.asarray(ref),
                               rtol=1e-3, atol=1e-3)

    print("KERNEL_OK")
</pallas_src>

<mosaic_0001>
module attributes {stable_mosaic.version = 11 : i64} {
  func.func @soft_pos_embed_kernel(%arg0: i32, %arg1: memref<1x16x512xf32, #tpu.memory_space<vmem>>, %arg2: memref<16x64xf32, #tpu.memory_space<vmem>>, %arg3: memref<64x512xf32, #tpu.memory_space<vmem>>, %arg4: memref<1x512xf32, #tpu.memory_space<vmem>>, %arg5: memref<1x16x512xf32, #tpu.memory_space<vmem>>) attributes {dimension_semantics = [#tpu.dimension_semantics<parallel>], iteration_bounds = array<i64: 2>, scalar_prefetch = 0 : i64, scratch_operands = 0 : i64, tpu.core_type = #tpu.core_type<tc>, window_params = [{transform_indices = @transform_0, window_bounds = array<i64: 1, 16, 512>}, {pipeline_mode = #tpu.pipeline_mode<synchronous>, transform_indices = @transform_1, window_bounds = array<i64: 16, 64>}, {pipeline_mode = #tpu.pipeline_mode<synchronous>, transform_indices = @transform_2, window_bounds = array<i64: 64, 512>}, {pipeline_mode = #tpu.pipeline_mode<synchronous>, transform_indices = @transform_3, window_bounds = array<i64: 1, 512>}, {transform_indices = @transform_4, window_bounds = array<i64: 1, 16, 512>}]} {
    %c0 = arith.constant 0 : index
    %c0_0 = arith.constant 0 : index
    %0 = vector.load %arg2[%c0, %c0_0] : memref<16x64xf32, #tpu.memory_space<vmem>>, vector<16x64xf32>
    %c0_1 = arith.constant 0 : index
    %c0_2 = arith.constant 0 : index
    %1 = vector.load %arg3[%c0_1, %c0_2] : memref<64x512xf32, #tpu.memory_space<vmem>>, vector<64x512xf32>
    %cst = arith.constant dense<0.000000e+00> : vector<16x512xf32>
    %2 = tpu.matmul %0, %1, %cst {dimension_numbers = #tpu.dot_dimension_numbers<[1], [0], [0], [1], [0, 0, 1, 1], [], []>} : vector<16x64xf32>, vector<64x512xf32>, vector<16x512xf32> -> vector<16x512xf32>
    %c0_3 = arith.constant 0 : index
    %c0_4 = arith.constant 0 : index
    %3 = vector.load %arg4[%c0_3, %c0_4] : memref<1x512xf32, #tpu.memory_space<vmem>>, vector<1x512xf32>
    %4 = vector.shape_cast %3 : vector<1x512xf32> to vector<512xf32>
    %5 = vector.shape_cast %4 : vector<512xf32> to vector<1x512xf32>
    %6 = vector.broadcast %5 : vector<1x512xf32> to vector<16x512xf32>
    %7 = arith.addf %2, %6 : vector<16x512xf32>
    %c0_5 = arith.constant 0 : index
    %c0_6 = arith.constant 0 : index
    %c0_7 = arith.constant 0 : index
    %8 = vector.load %arg1[%c0_5, %c0_6, %c0_7] : memref<1x16x512xf32, #tpu.memory_space<vmem>>, vector<1x16x512xf32>
    %9 = vector.shape_cast %8 : vector<1x16x512xf32> to vector<16x512xf32>
    %10 = arith.addf %9, %7 : vector<16x512xf32>
    %c0_8 = arith.constant 0 : index
    %c0_9 = arith.constant 0 : index
    %c0_10 = arith.constant 0 : index
    %11 = vector.load %arg5[%c0_8, %c0_9, %c0_10] : memref<1x16x512xf32, #tpu.memory_space<vmem>>, vector<1x16x512xf32>
    %12 = vector.shape_cast %11 : vector<1x16x512xf32> to vector<16x512xf32>
    %13 = vector.shape_cast %10 : vector<16x512xf32> to vector<1x16x512xf32>
    tpu.vector_store %arg5[%c0_8, %c0_9, %c0_10], %13 {strides = array<i32>} : memref<1x16x512xf32, #tpu.memory_space<vmem>>, vector<1x16x512xf32>,
    return
  }
  func.func @transform_0(%arg0: i32) -> (i32, i32, i32) {
    %c0_i32 = arith.constant 0 : i32
    %c0_i32_0 = arith.constant 0 : i32
    %c0_i32_1 = arith.constant 0 : i32
    return %arg0, %c0_i32, %c0_i32_0 : i32, i32, i32
  }
  func.func @transform_1(%arg0: i32) -> (i32, i32) {
    %c0_i32 = arith.constant 0 : i32
    %c0_i32_0 = arith.constant 0 : i32
    %c0_i32_1 = arith.constant 0 : i32
    return %c0_i32, %c0_i32_0 : i32, i32
  }
  func.func @transform_2(%arg0: i32) -> (i32, i32) {
    %c0_i32 = arith.constant 0 : i32
    %c0_i32_0 = arith.constant 0 : i32
    %c0_i32_1 = arith.constant 0 : i32
    return %c0_i32, %c0_i32_0 : i32, i32
  }
  func.func @transform_3(%arg0: i32) -> (i32, i32) {
    %c0_i32 = arith.constant 0 : i32
    %c0_i32_0 = arith.constant 0 : i32
    %c0_i32_1 = arith.constant 0 : i32
    return %c0_i32, %c0_i32_0 : i32, i32
  }
  func.func @transform_4(%arg0: i32) -> (i32, i32, i32) {
    %c0_i32 = arith.constant 0 : i32
    %c0_i32_0 = arith.constant 0 : i32
    %c0_i32_1 = arith.constant 0 : i32
    return %arg0, %c0_i32, %c0_i32_0 : i32, i32, i32
  }
}

</mosaic_0001>

<bundles_post_ra>
// kernel: tile.8
= control target key start
LH: loop header
LB: loop body
LE: loop exit
PB: predicated region body
PF: predicated region fallthrough
CT: control target
= control target key end

     0   :  { %s28_s0 = inlined_call_operand.vmem [shape: f32[32], index: 0, kind: input, shape index: {}]   ;;  %s29_s1 = inlined_call_operand.vmem [shape: f32[16,32], index: 1, kind: output, shape index: {}]  }
   0x1   :  { %v4_v0 = vld [vmem:[%s28_s0] ss:$0 sm:$0xff] }
   0x2   :  { %5 = vst [vmem:[%s29_s1] sm:$0xff] %v4_v0  ;;  %8 = vst [vmem:[%s29_s1 + $0x8] sm:$0xff] %v4_v0 }

// kernel: tile.9
= control target key start
LH: loop header
LB: loop body
LE: loop exit
PB: predicated region body
PF: predicated region fallthrough
CT: control target
= control target key end

     0   :  { %s57_s8 = smov 96   ;;  %vm3_vm0 = vcmask 261120   ;;  %s59_s15 = smov 64   ;;  %vm9_vm1 = vcmask 1048320   ;;  %vm15_vm2 = vcmask 785920   ;;  %vm21_vm3 = vcmask 523520   ;;  %s94_s0 = inlined_call_operand.vmem [shape: f32[16,32], index: 0, kind: input, shape index: {}]   ;;  %s95_s1 = inlined_call_operand.vmem [shape: f32[1,512], index: 1, kind: output, shape index: {}]  }
   0x1   :  { %v48_v0 = vld [vmem:[%s94_s0 + $0x3] ss:$4 sm:$0xf]   ;;  %v49_v1 = vld [vmem:[%s94_s0 + $0x2] ss:$4 sm:$0xf]  }
   0x2   :  { %7 = vrot.lane.b32.xlu0 %v48_v0, %s57_s8  ;;  %v50_v2 = vld [vmem:[%s94_s0 + $0x1] ss:$4 sm:$0xf]   ;;  %v2_v3 = vld [vmem:[%s94_s0] ss:$4 sm:$0xf]  }
   0x3   :  { %s58_s0 = smov 32   ;;  %4 = vst.msk [vmem:[#allocation0] ss:$8 sm:$0xf] %vm3_vm0, %v2_v3  }
   0x4   :  { %19 = vrot.lane.b32.xlu1 %v50_v2, %s58_s0 }
   0x6   :  { %13 = vrot.lane.b32.xlu0 %v49_v1, %s59_s15 }
  0x74   :  { %v8_v4 = vpop.permute.xlu0 %7  }
  0x75   :  { %10 = vst.msk [vmem:[#allocation0] ss:$8 sm:$0xf] %vm9_vm1, %v8_v4  }
  0x76   :  { %v20_v5 = vpop.permute.xlu1 %19  }
  0x78   :  { %v14_v6 = vpop.permute.xlu0 %13  }
  0x79   :  { %16 = vst.msk [vmem:[#allocation0] ss:$8 sm:$0xf] %vm15_vm2, %v14_v6  }
  0x7a   :  { %22 = vst.msk [vmem:[#allocation0] ss:$8 sm:$0xf] %vm21_vm3, %v20_v5  }
  0x81   :  { %v26_v7 = vld [vmem:[#allocation0] sm:$0x1]  ;;  %v30_v8 = vld [vmem:[#allocation0 + $0x8] sm:$0x1]  ;;  %v35_v9 = vld [vmem:[#allocation0 + $0x10] sm:$0x1] }
  0x82   :  { %28 = vst [vmem:[%s95_s1] sm:$0x1] %v26_v7  ;;  %51 = vst [vmem:[%s95_s1 + $0x1] sm:$0x1] %v30_v8  ;;  %v41_v10 = vld [vmem:[#allocation0 + $0x18] sm:$0x1] }
  0x83   :  { %52 = vst [vmem:[%s95_s1 + $0x2] sm:$0x1] %v35_v9  ;;  %53 = vst [vmem:[%s95_s1 + $0x3] sm:$0x1] %v41_v10 }

// kernel: soft_position_embed.1
= control target key start
LH: loop header
LB: loop body
LE: loop exit
PB: predicated region body
PF: predicated region fallthrough
CT: control target
= control target key end

     0   :  { %s586_s15 = smov 0   ;;  %s736_s0 = inlined_call_operand.vmem [shape: f32[2,16,512], index: 0, kind: input, shape index: {}]   ;;  %s737_s1 = inlined_call_operand.vmem [shape: f32[16,64], index: 1, kind: input, shape index: {}]   ;;  %s738_s2 = inlined_call_operand.vmem [shape: f32[64,512], index: 2, kind: input, shape index: {}]   ;;  %s739_s3 = inlined_call_operand.vmem [shape: f32[1,512], index: 3, kind: input, shape index: {}]   ;;  %s740_s4 = inlined_call_operand.vmem [shape: f32[2,16,512], index: 4, kind: output, shape index: {}]  }
   0x1 LB: > { %s494_s16 = sadd.s32 4294967295, %s558_s15   ;;  %p498_p0 = scmp.ge.s32.totalorder %s558_s15, 1  ;;  %s558_s15 = sphi %s586_s15, %s14_s15  }
   0x2   : > { %p162_p1 = scmp.lt.s32.totalorder %s558_s15, 3 }
   0x4   : > { %p163_p2 = pnand %p498_p0, %p162_p1 }
   0x5   : > { %v201_v0 = vld [vmem:[%s738_s2 + $0x8] sm:$0xff] (!%p163_p2)  ;;  %v203_v2 = vld [vmem:[%s738_s2 + $0x18] sm:$0xff] (!%p163_p2)  ;;  %v200_v5 = vld [vmem:[%s738_s2] sm:$0xff] (!%p163_p2)  ;;  %v560_v7 = vmov (!%p163_p2), 0.0   ;;  %vm254_vm0 = vcmask (!%p163_p2), 523264   ;;  %v234_v51 = vlaneseq (!%p163_p2)  ;;  %p188_p3 = scmp.lt.s32.totalorder (!%p163_p2), %s494_s16, 1 }
   0x6   : > { %166 = sbr.rel (%p163_p2) target bundleno = 248 (0xf8), region = 36  ;;  %v205_v1 = vld [vmem:[%s738_s2 + $0x28] sm:$0xff] (!%p163_p2)  ;;  %v207_v4 = vld [vmem:[%s738_s2 + $0x38] sm:$0xff] (!%p163_p2)  ;;  %v204_v6 = vld [vmem:[%s738_s2 + $0x20] sm:$0xff] (!%p163_p2)  ;;  %325 = vmatprep.mubr.f32.mxu0 (!%p163_p2), %v560_v7  ;;  %402 = vmatprep.mubr.f32.mxu1 (!%p163_p2), %v560_v7 }
   0x7   : > { %v511_v3 = vpack.c.bf16 (!%p163_p2), %v205_v1, %v201_v0  ;;  %v527_v8 = vpack.c.bf16 (!%p163_p2), %v207_v4, %v203_v2  ;;  %v513_v9 = vpack.c.bf16 (!%p163_p2), %v204_v6, %v200_v5  ;;  %v202_v10 = vld [vmem:[%s738_s2 + $0x10] sm:$0xff] (!%p163_p2)  ;;  %v209_v12 = vld [vmem:[%s738_s2 + $0x48] sm:$0xff] (!%p163_p2)  ;;  %v211_v15 = vld [vmem:[%s738_s2 + $0x58] sm:$0xff] (!%p163_p2)  ;;  %v235_v52 = vshrl.u32 (!%p163_p2), %v234_v51, 7 }
   0x8   : > { %v206_v11 = vld [vmem:[%s738_s2 + $0x30] sm:$0xff] (!%p163_p2)  ;;  %v213_v14 = vld [vmem:[%s738_s2 + $0x68] sm:$0xff] (!%p163_p2)  ;;  %v215_v16 = vld [vmem:[%s738_s2 + $0x78] sm:$0xff] (!%p163_p2) }
   0x9   : > { %512 = vmatprep.subr.bf16.mxu0 (!%p163_p2), %v511_v3  ;;  %v529_v13 = vpack.c.bf16 (!%p163_p2), %v206_v11, %v202_v10  ;;  %528 = vmatprep.subr.bf16.mxu1 (!%p163_p2), %v527_v8  ;;  %v515_v17 = vpack.c.bf16 (!%p163_p2), %v213_v14, %v209_v12  ;;  %v531_v18 = vpack.c.bf16 (!%p163_p2), %v215_v16, %v211_v15  ;;  %v208_v19 = vld [vmem:[%s738_s2 + $0x40] sm:$0xff] (!%p163_p2)  ;;  %v210_v21 = vld [vmem:[%s738_s2 + $0x50] sm:$0xff] (!%p163_p2)  ;;  %v217_v24 = vld [vmem:[%s738_s2 + $0x88] sm:$0xff] (!%p163_p2)  ;;  %v236_v53 = vsub.s32 (!%p163_p2), 0, %v235_v52 }
   0xa   : > { %514 = vmatpush1.bf16.msra.mxu0 (!%p163_p2), %v513_v9  ;;  %v212_v20 = vld [vmem:[%s738_s2 + $0x60] sm:$0xff] (!%p163_p2)  ;;  %v214_v23 = vld [vmem:[%s738_s2 + $0x70] sm:$0xff] (!%p163_p2)  ;;  %v221_v25 = vld [vmem:[%s738_s2 + $0xa8] sm:$0xff] (!%p163_p2)  ;;  %v244_v55 = vsub.s32 (!%p163_p2), 2, %v235_v52  ;;  %v240_v56 = vsub.s32 (!%p163_p2), 1, %v235_v52  ;;  %v248_v57 = vsub.s32 (!%p163_p2), 3, %v235_v52 }
   0xb   : > { %530 = vmatpush1.bf16.msra.mxu1 (!%p163_p2), %v529_v13  ;;  %v517_v22 = vpack.c.bf16 (!%p163_p2), %v212_v20, %v208_v19  ;;  %516 = vmatprep.subr.bf16.mxu0 (!%p163_p2), %v515_v17  ;;  %v533_v26 = vpack.c.bf16 (!%p163_p2), %v214_v23, %v210_v21  ;;  %v519_v27 = vpack.c.bf16 (!%p163_p2), %v221_v25, %v217_v24  ;;  %v219_v28 = vld [vmem:[%s738_s2 + $0x98] sm:$0xff] (!%p163_p2)  ;;  %v216_v30 = vld [vmem:[%s738_s2 + $0x80] sm:$0xff] (!%p163_p2)  ;;  %v218_v33 = vld [vmem:[%s738_s2 + $0x90] sm:$0xff] (!%p163_p2) }
   0xc   : > { %532 = vmatprep.subr.bf16.mxu1 (!%p163_p2), %v531_v18  ;;  %v223_v29 = vld [vmem:[%s738_s2 + $0xb8] sm:$0xff] (!%p163_p2)  ;;  %v220_v32 = vld [vmem:[%s738_s2 + $0xa0] sm:$0xff] (!%p163_p2)  ;;  %v222_v34 = vld [vmem:[%s738_s2 + $0xb0] sm:$0xff] (!%p163_p2) }
   0xd   : > { %v535_v31 = vpack.c.bf16 %v223_v29, %v219_v28  ;;  %v521_v35 = vpack.c.bf16 %v220_v32, %v216_v30  ;;  %v225_v36 = vld [vmem:[%s738_s2 + $0xc8] sm:$0xff]  ;;  %v227_v38 = vld [vmem:[%s738_s2 + $0xd8] sm:$0xff]  ;;  %v537_v39 = vpack.c.bf16 %v222_v34, %v218_v33  ;;  %v224_v42 = vld [vmem:[%s738_s2 + $0xc0] sm:$0xff]  ;;  %s742_s16 = smov (!%p188_p3, %s494_s16), 1 }
   0xe   : > { %518 = vmatpush1.bf16.msra.mxu0 %v517_v22  ;;  %v229_v37 = vld [vmem:[%s738_s2 + $0xe8] sm:$0xff]  ;;  %v231_v41 = vld [vmem:[%s738_s2 + $0xf8] sm:$0xff]  ;;  %v228_v43 = vld [vmem:[%s738_s2 + $0xe0] sm:$0xff]  ;;  %s509_s11 = sshll.u32 %s742_s16, 6 }
   0xf   : > { %534 = vmatpush1.bf16.msra.mxu1 %v533_v26  ;;  %520 = vmatprep.subr.bf16.mxu0 %v519_v27  ;;  %v523_v40 = vpack.c.bf16 %v229_v37, %v225_v36  ;;  %v539_v44 = vpack.c.bf16 %v231_v41, %v227_v38  ;;  %v226_v45 = vld [vmem:[%s738_s2 + $0xd0] sm:$0xff]  ;;  %v525_v47 = vpack.c.bf16 %v228_v43, %v224_v42  ;;  %v198_v49 = vld [vmem:[%s737_s1] sm:$0xff]  ;;  %v199_v50 = vld [vmem:[%s737_s1 + $0x8] sm:$0xff]  ;;  %s710_s18 = scalar_lea.vmem %s736_s0, %s509_s11  ;;  %s718_s20 = scalar_lea.vmem %s740_s4, %s509_s11 }
  0x10   : > { %536 = vmatprep.subr.bf16.mxu1 %v535_v31  ;;  %v230_v46 = vld [vmem:[%s738_s2 + $0xf0] sm:$0xff]  ;;  %v232_v54 = vld [vmem:[%s739_s3] sm:$0xf]  ;;  %v416_v4 = vld [vmem:[%s710_s18 + $0x8] sm:$0xff] }
  0x11   : > { %v541_v48 = vpack.c.bf16 %v230_v46, %v226_v45  ;;  %v237_v58 = vrot.slane %v232_v54, %v236_v53  ;;  %v245_v59 = vrot.slane %v232_v54, %v244_v55  ;;  %v241_v60 = vrot.slane %v232_v54, %v240_v56  ;;  %v415_v63 = vld [vmem:[%s710_s18] sm:$0xff]  ;;  %v417_v2 = vld [vmem:[%s710_s18 + $0x10] sm:$0xff]  ;;  %v418_v8 = vld [vmem:[%s710_s18 + $0x18] sm:$0xff] }
  0x12   : > { %522 = vmatpush1.bf16.msra.mxu0 %v521_v35  ;;  %v249_v61 = vrot.slane %v232_v54, %v248_v57  ;;  %v419_v14 = vld [vmem:[%s710_s18 + $0x20] sm:$0xff]  ;;  %v421_v18 = vld [vmem:[%s710_s18 + $0x30] sm:$0xff]  ;;  %v420_v20 = vld [vmem:[%s710_s18 + $0x28] sm:$0xff] }
  0x13   : > { %538 = vmatpush1.bf16.msra.mxu1 %v537_v39  ;;  %524 = vmatprep.subr.bf16.mxu0 %v523_v40  ;;  %v422_v24 = vld [vmem:[%s710_s18 + $0x38] sm:$0xff] }
  0x14   : > { %540 = vmatprep.subr.bf16.mxu1 %v539_v44 }
  0x16   : > { %526 = vmatpush1.bf16.msra.mxu0 %v525_v47 }
  0x17   : > { %542 = vmatpush1.bf16.msra.mxu1 %v541_v48 }
  0x19   : > { %503 = vmatmul.mubr.msk.f32.vlgmr.msra.gmra.mrb[0].mxu0 %vm254_vm0, %v198_v49 }
  0x1a   : > { %505 = vmatmul.mubr.msk.f32.vlgmr.msra.gmra.mrb[0].mxu1 %vm254_vm0, %v198_v49  ;;  %331 = vmatprep.mubr.f32.mxu0 %v560_v7 }
  0x1b   : > { %408 = vmatprep.mubr.f32.mxu1 %v560_v7 }
  0x1d   : > { %504 = vmatmul.mubr.msk.f32.gmra.mrb[2].mxu0 %vm254_vm0, %v199_v50 }
  0x1e   : > { %506 = vmatmul.mubr.msk.f32.gmra.mrb[2].mxu1 %vm254_vm0, %v199_v50 }
  0xec   : > { %v327_v62 = vpop.f32.mrb[0].mxu0 }
  0xed   : > { %v328_v0 = vadd.f32 %v327_v62, %v237_v58  ;;  %v404_v1 = vpop.f32.mrb[0].mxu1  ;;  %v329_v3 = vpop.f32.mrb[1].mxu0 }
  0xee   : > { %v405_v5 = vadd.f32 %v404_v1, %v245_v59  ;;  %v330_v6 = vadd.f32 %v329_v3, %v241_v60  ;;  %v406_v7 = vpop.f32.mrb[1].mxu1 }
  0xef   : > { %v423_v9 = vadd.f32 %v415_v63, %v328_v0  ;;  %v407_v10 = vadd.f32 %v406_v7, %v249_v61 }
  0xf0   : > { %v425_v11 = vadd.f32 %v417_v2, %v405_v5  ;;  %v424_v12 = vadd.f32 %v416_v4, %v330_v6  ;;  %v333_v13 = vpop.f32.mrb[2].mxu0 }
  0xf1   : > { %431 = vst [vmem:[%s718_s20] sm:$0xff] %v423_v9  ;;  %v426_v15 = vadd.f32 %v418_v8, %v407_v10  ;;  %v334_v16 = vadd.f32 %v333_v13, %v237_v58  ;;  %v410_v17 = vpop.f32.mrb[2].mxu1  ;;  %v335_v19 = vpop.f32.mrb[3].mxu0 }
  0xf2   : > { %433 = vst [vmem:[%s718_s20 + $0x10] sm:$0xff] %v425_v11  ;;  %432 = vst [vmem:[%s718_s20 + $0x8] sm:$0xff] %v424_v12  ;;  %v411_v21 = vadd.f32 %v410_v17, %v245_v59  ;;  %v336_v22 = vadd.f32 %v335_v19, %v241_v60  ;;  %v412_v23 = vpop.f32.mrb[3].mxu1 }
  0xf3   : > { %434 = vst [vmem:[%s718_s20 + $0x18] sm:$0xff] %v426_v15  ;;  %v427_v25 = vadd.f32 %v419_v14, %v334_v16  ;;  %v413_v26 = vadd.f32 %v412_v23, %v249_v61 }
  0xf4   : > { %v429_v27 = vadd.f32 %v421_v18, %v411_v21  ;;  %v428_v28 = vadd.f32 %v420_v20, %v336_v22 }
  0xf5   : > { %435 = vst [vmem:[%s718_s20 + $0x20] sm:$0xff] %v427_v25  ;;  %v430_v29 = vadd.f32 %v422_v24, %v413_v26 }
  0xf6   : > { %437 = vst [vmem:[%s718_s20 + $0x30] sm:$0xff] %v429_v27  ;;  %436 = vst [vmem:[%s718_s20 + $0x28] sm:$0xff] %v428_v28 }
  0xf7   : > { %438 = vst [vmem:[%s718_s20 + $0x38] sm:$0xff] %v430_v29 }
  0xf8 PF: > { %s14_s15 = sadd.s32 1, %s558_s15  }
  0xf9   : > { %p11_p4 = scmp.ge.s32.totalorder %s14_s15, 4  }
  0xfb   :  { %13 = sbr.rel (!%p11_p4) target bundleno = 1 (0x1), region = 66 }

</bundles_post_ra>
